<compile_context>
chip_gen: v7x
topology: tpu7x:2x2x1
jax: 0.10.0
libtpu: 0.0.40
codegen_flags: <defaults>
</compile_context>

<pallas_src>
import jax
import jax.numpy as jnp
from jax.experimental import pallas as pl
from jax.experimental.pallas import tpu as pltpu


def _relu(x):
    return jnp.maximum(x, 0.0)


def _round_up(x, m):
    return ((x + m - 1) // m) * m


# ---------------------------------------------------------------------------
# Kernel A: per-tile forward pass -> stacked [advantages (band rows); value].
# ---------------------------------------------------------------------------
def _dueling_forward_kernel(x_ref,
                            w1_ref, b1_ref, w2_ref, b2_ref,   # feature layer
                            wva_ref, bva_ref,                 # fused value|adv hidden
                            wh_ref, bh_ref,                   # fused [adv; value] head
                            qs_ref):
    x = x_ref[...]                                                       # (band, TB)

    # feature_layer: ReLU(W1 @ x + b1) -> ReLU(W2 @ h1 + b2)
    h1 = _relu(jnp.dot(w1_ref[...], x,
                       preferred_element_type=jnp.float32) + b1_ref[...])
    feats = _relu(jnp.dot(w2_ref[...], h1.astype(w2_ref.dtype),
                          preferred_element_type=jnp.float32) + b2_ref[...])

    # Fused value/advantage hidden layer: one (2h, h) @ (h, TB) matmul.
    vha = _relu(jnp.dot(wva_ref[...], feats.astype(wva_ref.dtype),
                        preferred_element_type=jnp.float32) + bva_ref[...])

    # Fused [advantage; value] head: one (band+1, 2h) @ (2h, TB) matmul
    # (block weight with zero off-blocks selects the right hidden stream).
    qs_ref[...] = (jnp.dot(wh_ref[...], vha.astype(wh_ref.dtype),
                           preferred_element_type=jnp.float32) + bh_ref[...])


# ---------------------------------------------------------------------------
# Kernel B: dueling combine with the global advantage mean + sigmoid.
# ---------------------------------------------------------------------------
def _dueling_combine_kernel(mean_ref, qs_ref, o_ref):
    qs = qs_ref[...]                     # (band+1, TB): rows [:band]=adv, row band=value
    adv = qs[:-1, :]
    value = qs[-1:, :]
    o_ref[...] = jax.nn.sigmoid(value + (adv - mean_ref[0]))


# ---------------------------------------------------------------------------
# Wrapper
# ---------------------------------------------------------------------------
def _pick_batch_tile(band, hidden, in_itemsize, *, max_tb=2048,
                     vmem_budget_bytes=24 * 1024 * 1024):
    """Largest lane-dense batch tile whose streamed x/output blocks (double-
    buffered) plus f32 activation temporaries fit well inside the scoped VMEM
    limit (weights are VMEM-resident on top of this budget)."""
    per_col = (2 * band * in_itemsize                       # x tile (double-buffered)
               + 4 * (hidden + hidden + 2 * hidden)         # h1, feats, vha (f32)
               + 2 * 4 * (2 * band + 2))                    # stacked/final outputs (dbl-buf)
    tb = max_tb
    while tb > 128 and tb * per_col > vmem_budget_bytes:
        tb //= 2
    return tb


def dueling_forward(state, params, *, mxu_dtype=jnp.float32):
    B, band = state.shape
    h = 2 * band
    f32 = jnp.float32
    itemsize = jnp.dtype(mxu_dtype).itemsize

    tb = _pick_batch_tile(band, h, itemsize)
    tb = min(tb, _round_up(B, 128))            # don't tile wider than the padded batch
    B_pad = _round_up(B, tb)
    n_tiles = B_pad // tb

    # Batch on the 128-lane axis, zero-padded to a lane-dense multiple of 128.
    x_t = jnp.pad(state.T.astype(mxu_dtype), ((0, 0), (0, B_pad - B)))

    # --- one-time wrapper-side weight fusion / layout plumbing --------------
    # Fused value|advantage hidden layer: rows [0:h) value-hidden, [h:2h) adv-hidden.
    w_va = jnp.concatenate([params["wv1"], params["wa1"]], axis=0)       # (2h, h)
    b_va = jnp.concatenate([params["bv1"], params["ba1"]], axis=0)       # (2h, 1)
    # Fused [advantage; value] head as a block matrix over the fused hidden:
    # advantage rows read the adv-hidden half, the value row reads the value-hidden half.
    w_head = jnp.concatenate([
        jnp.concatenate([jnp.zeros((band, h), f32), params["wa2"]], axis=1),
        jnp.concatenate([params["wv2"], jnp.zeros((1, h), f32)], axis=1),
    ], axis=0)                                                           # (band+1, 2h)
    b_head = jnp.concatenate([params["ba2"], params["bv2"]], axis=0)     # (band+1, 1)

    cast = lambda w: w.astype(mxu_dtype)      # bf16 MXU operands on v6e/v7x; biases stay f32
    args = (x_t,
            cast(params["w1"]), params["b1"].astype(f32),
            cast(params["w2"]), params["b2"].astype(f32),
            cast(w_va), b_va.astype(f32),
            cast(w_head), b_head.astype(f32))

    def batch_spec(rows):
        return pl.BlockSpec((rows, tb), lambda i: (0, i))

    def resident_spec(shape):
        # Constant index_map: fetched once, VMEM-resident across batch tiles.
        # TODO(synk): on v7x (64 MiB VMEM) very large-h weights should also use
        # pipeline_mode=pl.Buffered(1) to drop the default 2x double-buffering.
        return pl.BlockSpec(shape, lambda i: (0, 0))

    flops_fwd = 2 * B_pad * (h * band + h * h + 2 * h * h + (band + 1) * 2 * h)
    bytes_fwd = (int(x_t.size) * itemsize
                 + sum(int(a.size) * a.dtype.itemsize for a in args[1:])
                 + (band + 1) * B_pad * 4)

    # Kernel A: forward pass, lane-dense stacked output (band+1, B_pad) in f32.
    qs = pl.pallas_call(
        _dueling_forward_kernel,
        out_shape=jax.ShapeDtypeStruct((band + 1, B_pad), jnp.float32),
        grid_spec=pltpu.PrefetchScalarGridSpec(
            num_scalar_prefetch=0,
            grid=(n_tiles,),
            in_specs=[batch_spec(band)] + [resident_spec(a.shape) for a in args[1:]],
            out_specs=batch_spec(band + 1)),
        compiler_params=pltpu.CompilerParams(
            dimension_semantics=("parallel",),
            vmem_limit_bytes=32 * 1024 * 1024),
        cost_estimate=pl.CostEstimate(
            flops=flops_fwd, transcendentals=0, bytes_accessed=bytes_fwd),
    )(*args)

    # Global advantage mean over the REAL batch only (padding excluded),
    # computed once (exact; replaces the previous per-tile SMEM accumulator).
    adv_mean = jnp.mean(qs[:band, :B]).astype(jnp.float32).reshape((1,))

    # Kernel B: (value + adv - mean) -> sigmoid, batch axis parallel.
    out_pad = pl.pallas_call(
        _dueling_combine_kernel,
        out_shape=jax.ShapeDtypeStruct((band, B_pad), jnp.float32),
        grid_spec=pltpu.PrefetchScalarGridSpec(
            num_scalar_prefetch=1,                       # the scalar mean (SMEM)
            grid=(n_tiles,),
            in_specs=[pl.BlockSpec((band + 1, tb), lambda i, m: (0, i))],
            out_specs=pl.BlockSpec((band, tb), lambda i, m: (0, i))),
        compiler_params=pltpu.CompilerParams(
            dimension_semantics=("parallel",),
            vmem_limit_bytes=32 * 1024 * 1024),
        cost_estimate=pl.CostEstimate(
            flops=2 * band * B_pad, transcendentals=band * B_pad,
            bytes_accessed=(2 * band + 1) * B_pad * 4),
    )(adv_mean, qs)

    return out_pad[:, :B].T


# ---------------------------------------------------------------------------
# Params + pure-JAX reference (mirrors the PyTorch module exactly)
# ---------------------------------------------------------------------------
def init_params(key, band):
    """Deterministic synthetic init, PyTorch (out, in) weight layout,
    biases stored as (out, 1) columns. Weights ~ U(-0.1, 0.1) as in the module."""
    h = 2 * band
    shapes = {
        "w1": (h, band),  "b1": (h, 1),
        "w2": (h, h),     "b2": (h, 1),
        "wv1": (h, h),    "bv1": (h, 1),
        "wv2": (1, h),    "bv2": (1, 1),
        "wa1": (h, h),    "ba1": (h, 1),
        "wa2": (band, h), "ba2": (band, 1),
    }
    params = {}
    keys = jax.random.split(key, len(shapes))
    for k, (name, shp) in zip(keys, shapes.items()):
        params[name] = jax.random.uniform(k, shp, jnp.float32, minval=-0.1, maxval=0.1)
    return params


def dueling_reference(state, p):
    relu = lambda z: jnp.maximum(z, 0.0)
    lin = lambda x, w, b: x @ w.T + b.T
    f = relu(lin(relu(lin(state, p["w1"], p["b1"])), p["w2"], p["b2"]))
    v = lin(relu(lin(f, p["wv1"], p["bv1"])), p["wv2"], p["bv2"])
    a = lin(relu(lin(f, p["wa1"], p["ba1"])), p["wa2"], p["ba2"])
    q = v + (a - jnp.mean(a))                  # GLOBAL mean, as in the module
    return jax.nn.sigmoid(q)


if __name__ == "__main__":
    band = 16
    batch = 8

    key = jax.random.PRNGKey(0)
    kx, kp = jax.random.split(key)
    state = jax.random.normal(kx, (batch, band), dtype=jnp.float32)
    params = init_params(kp, band)

    ref = dueling_reference(state, params)

    # f32 MXU operands: parity with the f32 reference.
    out_f32 = jax.block_until_ready(dueling_forward(state, params))
    assert out_f32.shape == (batch, band)
    assert jnp.allclose(out_f32, ref, atol=1e-5, rtol=1e-5), "f32 mismatch vs reference"

    # bf16 MXU operands (v6e/v7x-preferred), f32 accumulation: looser tolerance.
    out_bf16 = jax.block_until_ready(
        dueling_forward(state, params, mxu_dtype=jnp.bfloat16))
    assert out_bf16.shape == (batch, band)
    assert jnp.allclose(out_bf16, ref, atol=5e-3, rtol=5e-2), "bf16 mismatch vs reference"

    print("KERNEL_OK")
</pallas_src>

<mosaic_0001>
module attributes {stable_mosaic.version = 11 : i64} {
  func.func @_dueling_forward_kernel(%arg0: i32, %arg1: memref<16x128xf32, #tpu.memory_space<vmem>>, %arg2: memref<32x16xf32, #tpu.memory_space<vmem>>, %arg3: memref<32x1xf32, #tpu.memory_space<vmem>>, %arg4: memref<32x32xf32, #tpu.memory_space<vmem>>, %arg5: memref<32x1xf32, #tpu.memory_space<vmem>>, %arg6: memref<64x32xf32, #tpu.memory_space<vmem>>, %arg7: memref<64x1xf32, #tpu.memory_space<vmem>>, %arg8: memref<17x64xf32, #tpu.memory_space<vmem>>, %arg9: memref<17x1xf32, #tpu.memory_space<vmem>>, %arg10: memref<17x128xf32, #tpu.memory_space<vmem>>) attributes {dimension_semantics = [#tpu.dimension_semantics<parallel>], iteration_bounds = array<i64: 1>, scalar_prefetch = 0 : i64, scratch_operands = 0 : i64, tpu.core_type = #tpu.core_type<tc>, window_params = [{transform_indices = @transform_0, window_bounds = array<i64: 16, 128>}, {pipeline_mode = #tpu.pipeline_mode<synchronous>, transform_indices = @transform_1, window_bounds = array<i64: 32, 16>}, {pipeline_mode = #tpu.pipeline_mode<synchronous>, transform_indices = @transform_2, window_bounds = array<i64: 32, 1>}, {pipeline_mode = #tpu.pipeline_mode<synchronous>, transform_indices = @transform_3, window_bounds = array<i64: 32, 32>}, {pipeline_mode = #tpu.pipeline_mode<synchronous>, transform_indices = @transform_4, window_bounds = array<i64: 32, 1>}, {pipeline_mode = #tpu.pipeline_mode<synchronous>, transform_indices = @transform_5, window_bounds = array<i64: 64, 32>}, {pipeline_mode = #tpu.pipeline_mode<synchronous>, transform_indices = @transform_6, window_bounds = array<i64: 64, 1>}, {pipeline_mode = #tpu.pipeline_mode<synchronous>, transform_indices = @transform_7, window_bounds = array<i64: 17, 64>}, {pipeline_mode = #tpu.pipeline_mode<synchronous>, transform_indices = @transform_8, window_bounds = array<i64: 17, 1>}, {transform_indices = @transform_9, window_bounds = array<i64: 17, 128>}]} {
    %c0 = arith.constant 0 : index
    %c0_0 = arith.constant 0 : index
    %0 = vector.load %arg1[%c0, %c0_0] : memref<16x128xf32, #tpu.memory_space<vmem>>, vector<16x128xf32>
    %c0_1 = arith.constant 0 : index
    %c0_2 = arith.constant 0 : index
    %1 = vector.load %arg2[%c0_1, %c0_2] : memref<32x16xf32, #tpu.memory_space<vmem>>, vector<32x16xf32>
    %cst = arith.constant dense<0.000000e+00> : vector<32x128xf32>
    %2 = tpu.matmul %1, %0, %cst {dimension_numbers = #tpu.dot_dimension_numbers<[1], [0], [0], [1], [0, 0, 1, 1], [], []>} : vector<32x16xf32>, vector<16x128xf32>, vector<32x128xf32> -> vector<32x128xf32>
    %c0_3 = arith.constant 0 : index
    %c0_4 = arith.constant 0 : index
    %3 = vector.load %arg3[%c0_3, %c0_4] : memref<32x1xf32, #tpu.memory_space<vmem>>, vector<32x1xf32>
    %4 = vector.broadcast %3 : vector<32x1xf32> to vector<32x128xf32>
    %5 = arith.addf %2, %4 : vector<32x128xf32>
    %cst_5 = arith.constant 0.000000e+00 : f32
    %6 = vector.broadcast %cst_5 : f32 to vector<32x128xf32>
    %7 = arith.maximumf %5, %6 : vector<32x128xf32>
    %c0_6 = arith.constant 0 : index
    %c0_7 = arith.constant 0 : index
    %8 = vector.load %arg4[%c0_6, %c0_7] : memref<32x32xf32, #tpu.memory_space<vmem>>, vector<32x32xf32>
    %cst_8 = arith.constant dense<0.000000e+00> : vector<32x128xf32>
    %9 = tpu.matmul %8, %7, %cst_8 {dimension_numbers = #tpu.dot_dimension_numbers<[1], [0], [0], [1], [0, 0, 1, 1], [], []>} : vector<32x32xf32>, vector<32x128xf32>, vector<32x128xf32> -> vector<32x128xf32>
    %c0_9 = arith.constant 0 : index
    %c0_10 = arith.constant 0 : index
    %10 = vector.load %arg5[%c0_9, %c0_10] : memref<32x1xf32, #tpu.memory_space<vmem>>, vector<32x1xf32>
    %11 = vector.broadcast %10 : vector<32x1xf32> to vector<32x128xf32>
    %12 = arith.addf %9, %11 : vector<32x128xf32>
    %cst_11 = arith.constant 0.000000e+00 : f32
    %13 = vector.broadcast %cst_11 : f32 to vector<32x128xf32>
    %14 = arith.maximumf %12, %13 : vector<32x128xf32>
    %c0_12 = arith.constant 0 : index
    %c0_13 = arith.constant 0 : index
    %15 = vector.load %arg6[%c0_12, %c0_13] : memref<64x32xf32, #tpu.memory_space<vmem>>, vector<64x32xf32>
    %cst_14 = arith.constant dense<0.000000e+00> : vector<64x128xf32>
    %16 = tpu.matmul %15, %14, %cst_14 {dimension_numbers = #tpu.dot_dimension_numbers<[1], [0], [0], [1], [0, 0, 1, 1], [], []>} : vector<64x32xf32>, vector<32x128xf32>, vector<64x128xf32> -> vector<64x128xf32>
    %c0_15 = arith.constant 0 : index
    %c0_16 = arith.constant 0 : index
    %17 = vector.load %arg7[%c0_15, %c0_16] : memref<64x1xf32, #tpu.memory_space<vmem>>, vector<64x1xf32>
    %18 = vector.broadcast %17 : vector<64x1xf32> to vector<64x128xf32>
    %19 = arith.addf %16, %18 : vector<64x128xf32>
    %cst_17 = arith.constant 0.000000e+00 : f32
    %20 = vector.broadcast %cst_17 : f32 to vector<64x128xf32>
    %21 = arith.maximumf %19, %20 : vector<64x128xf32>
    %c0_18 = arith.constant 0 : index
    %c0_19 = arith.constant 0 : index
    %22 = vector.load %arg8[%c0_18, %c0_19] : memref<17x64xf32, #tpu.memory_space<vmem>>, vector<17x64xf32>
    %cst_20 = arith.constant dense<0.000000e+00> : vector<17x128xf32>
    %23 = tpu.matmul %22, %21, %cst_20 {dimension_numbers = #tpu.dot_dimension_numbers<[1], [0], [0], [1], [0, 0, 1, 1], [], []>} : vector<17x64xf32>, vector<64x128xf32>, vector<17x128xf32> -> vector<17x128xf32>
    %c0_21 = arith.constant 0 : index
    %c0_22 = arith.constant 0 : index
    %24 = vector.load %arg9[%c0_21, %c0_22] : memref<17x1xf32, #tpu.memory_space<vmem>>, vector<17x1xf32>
    %25 = vector.broadcast %24 : vector<17x1xf32> to vector<17x128xf32>
    %26 = arith.addf %23, %25 : vector<17x128xf32>
    %c0_23 = arith.constant 0 : index
    %c0_24 = arith.constant 0 : index
    %27 = vector.load %arg10[%c0_23, %c0_24] : memref<17x128xf32, #tpu.memory_space<vmem>>, vector<17x128xf32>
    tpu.vector_store %arg10[%c0_23, %c0_24], %26 {strides = array<i32>} : memref<17x128xf32, #tpu.memory_space<vmem>>, vector<17x128xf32>,
    return
  }
  func.func @transform_0(%arg0: i32) -> (i32, i32) {
    %c0_i32 = arith.constant 0 : i32
    %c0_i32_0 = arith.constant 0 : i32
    return %c0_i32, %arg0 : i32, i32
  }
  func.func @transform_1(%arg0: i32) -> (i32, i32) {
    %c0_i32 = arith.constant 0 : i32
    %c0_i32_0 = arith.constant 0 : i32
    %c0_i32_1 = arith.constant 0 : i32
    return %c0_i32, %c0_i32_0 : i32, i32
  }
  func.func @transform_2(%arg0: i32) -> (i32, i32) {
    %c0_i32 = arith.constant 0 : i32
    %c0_i32_0 = arith.constant 0 : i32
    %c0_i32_1 = arith.constant 0 : i32
    return %c0_i32, %c0_i32_0 : i32, i32
  }
  func.func @transform_3(%arg0: i32) -> (i32, i32) {
    %c0_i32 = arith.constant 0 : i32
    %c0_i32_0 = arith.constant 0 : i32
    %c0_i32_1 = arith.constant 0 : i32
    return %c0_i32, %c0_i32_0 : i32, i32
  }
  func.func @transform_4(%arg0: i32) -> (i32, i32) {
    %c0_i32 = arith.constant 0 : i32
    %c0_i32_0 = arith.constant 0 : i32
    %c0_i32_1 = arith.constant 0 : i32
    return %c0_i32, %c0_i32_0 : i32, i32
  }
  func.func @transform_5(%arg0: i32) -> (i32, i32) {
    %c0_i32 = arith.constant 0 : i32
    %c0_i32_0 = arith.constant 0 : i32
    %c0_i32_1 = arith.constant 0 : i32
    return %c0_i32, %c0_i32_0 : i32, i32
  }
  func.func @transform_6(%arg0: i32) -> (i32, i32) {
    %c0_i32 = arith.constant 0 : i32
    %c0_i32_0 = arith.constant 0 : i32
    %c0_i32_1 = arith.constant 0 : i32
    return %c0_i32, %c0_i32_0 : i32, i32
  }
  func.func @transform_7(%arg0: i32) -> (i32, i32) {
    %c0_i32 = arith.constant 0 : i32
    %c0_i32_0 = arith.constant 0 : i32
    %c0_i32_1 = arith.constant 0 : i32
    return %c0_i32, %c0_i32_0 : i32, i32
  }
  func.func @transform_8(%arg0: i32) -> (i32, i32) {
    %c0_i32 = arith.constant 0 : i32
    %c0_i32_0 = arith.constant 0 : i32
    %c0_i32_1 = arith.constant 0 : i32
    return %c0_i32, %c0_i32_0 : i32, i32
  }
  func.func @transform_9(%arg0: i32) -> (i32, i32) {
    %c0_i32 = arith.constant 0 : i32
    %c0_i32_0 = arith.constant 0 : i32
    return %c0_i32, %arg0 : i32, i32
  }
}

</mosaic_0001>

<bundles_post_ra>
// kernel: tpu_custom_call.1
= control target key start
LH: loop header
LB: loop body
LE: loop exit
PB: predicated region body
PF: predicated region fallthrough
CT: control target
= control target key end

     0   :  { %vm63_vm0 = vcmask 130048   ;;  %v816_v4 = vmov 0   ;;  %s1024_s0 = inlined_call_operand.vmem [shape: f32[16,128], index: 0, kind: input, shape index: {}]   ;;  %s1025_s1 = inlined_call_operand.vmem [shape: f32[32,16], index: 1, kind: input, shape index: {}]   ;;  %s1026_s2 = inlined_call_operand.vmem [shape: f32[32,1], index: 2, kind: input, shape index: {}]   ;;  %s1027_s3 = inlined_call_operand.vmem [shape: f32[32,32], index: 3, kind: input, shape index: {}]   ;;  %s1028_s4 = inlined_call_operand.vmem [shape: f32[32,1], index: 4, kind: input, shape index: {}]   ;;  %s1029_s5 = inlined_call_operand.vmem [shape: f32[64,32], index: 5, kind: input, shape index: {}]   ;;  %s1030_s6 = inlined_call_operand.vmem [shape: f32[64,1], index: 6, kind: input, shape index: {}]   ;;  %s1031_s7 = inlined_call_operand.vmem [shape: f32[17,64], index: 7, kind: input, shape index: {}]   ;;  %s1032_s8 = inlined_call_operand.vmem [shape: f32[17,1], index: 8, kind: input, shape index: {}]   ;;  %s1033_s9 = inlined_call_operand.hbm [shape: f32[17,128], index: 9, kind: output, shape index: {}]  }
   0x1   :  { %v33_v0 = vld [vmem:[%s1024_s0] sm:$0xff]  ;;  %v34_v1 = vld [vmem:[%s1024_s0 + $0x8] sm:$0xff]  ;;  %790 = vset.pattern.permute.xlu0 %v816_v4  ;;  %791 = vset.pattern.permute.xlu1 %v816_v4  ;;  %v41_v6 = vld [vmem:[%s1026_s2 + $0x10] sm:$0xff] }
   0x2   :  { %v35_v2 = vld [vmem:[%s1025_s1] sm:$0xff]  ;;  %v743_v3 = vpack.c.bf16 %v34_v1, %v33_v0  ;;  %v36_v7 = vld [vmem:[%s1025_s1 + $0x8] sm:$0xff]  ;;  %55 = vperm.xlu1 %791, %v41_v6   ;;  %v37_v9 = vld [vmem:[%s1025_s1 + $0x10] sm:$0xff] }
   0x3   :  { %678 = vmatprep.mubr.msk.f32.mxu0 %vm63_vm0, %v35_v2  ;;  %v39_v5 = vld [vmem:[%s1026_s2] sm:$0xff]  ;;  %v40_v8 = vld [vmem:[%s1026_s2 + $0x8] sm:$0xff]  ;;  %v42_v10 = vld [vmem:[%s1026_s2 + $0x18] sm:$0xff] }
   0x4   :  { %744 = vmatprep.subr.bf16.mxu0 %v743_v3  ;;  %45 = vperm.xlu0 %790, %v39_v5   ;;  %v38_v11 = vld [vmem:[%s1025_s1 + $0x18] sm:$0xff]  ;;  %v169_v12 = vld [vmem:[%s1028_s4] sm:$0xff] }
   0x5   :  { %746 = vmatpush3.bf16.msra.mxu0 %v743_v3 }
   0x6   :  { %60 = vperm.xlu1 %791, %v42_v10  }
   0x8   :  { %679 = vmatmul.mubr.msk.f32.vlgmr.msra.gmra.mrb[0].mxu0 %vm63_vm0, %v36_v7  ;;  %50 = vperm.xlu0 %790, %v40_v8  }
   0x9   :  { %681 = vmatprep.mubr.msk.f32.mxu0 %vm63_vm0, %v37_v9 }
   0xa   :  { %14 = vsyncpa [#allocation3], 0  ;;  %v170_v13 = vld [vmem:[%s1028_s4 + $0x8] sm:$0xff]  ;;  %v171_v14 = vld [vmem:[%s1028_s4 + $0x10] sm:$0xff]  ;;  %vm193_vm1 = vcmask 261120   ;;  %vm818_vm2 = vmmov 0  }
   0xb   :  { %180 = vperm.xlu1 %791, %v170_v13   ;;  %v172_v15 = vld [vmem:[%s1028_s4 + $0x18] sm:$0xff]  ;;  %v303_v16 = vld [vmem:[%s1030_s6] sm:$0xff]  ;;  %v304_v17 = vld [vmem:[%s1030_s6 + $0x8] sm:$0xff]  ;;  %vm509_vm3 = vcmask 523264   ;;  %s820_s12 = smov [#allocation2]  }
   0xc   :  { %682 = vmatmul.mubr.msk.f32.gmra.mrb[2].mxu0 %vm63_vm0, %v38_v11  ;;  %175 = vperm.xlu0 %790, %v169_v12   ;;  %v305_v18 = vld [vmem:[%s1030_s6 + $0x10] sm:$0xff]  ;;  %v306_v19 = vld [vmem:[%s1030_s6 + $0x18] sm:$0xff]  ;;  %v307_v20 = vld [vmem:[%s1030_s6 + $0x20] sm:$0xff]  ;;  %v817_v11 = vmov 0.0|0.0   ;;  %v819_v12 = vmov 0.0  }
   0xd   :  { %v308_v21 = vld [vmem:[%s1030_s6 + $0x28] sm:$0xff]  ;;  %v309_v22 = vld [vmem:[%s1030_s6 + $0x30] sm:$0xff]  ;;  %v310_v23 = vld [vmem:[%s1030_s6 + $0x38] sm:$0xff]  ;;  %s607_s6 = sshll.u32 %s820_s12, 4  ;;  %s608_s6 = int_to_ptr.vmem [resolvable:$true] %s607_s6 }
   0xe   :  { %v491_v24 = vld [vmem:[%s1032_s8] sm:$0xff]  ;;  %v492_v25 = vld [vmem:[%s1032_s8 + $0x8] sm:$0xff]  ;;  %v493_v26 = vld [vmem:[%s1032_s8 + $0x10] sm:$0x1]  ;;  %p797_p1 = scmp.lt.s32.totalorder %s608_s6, %s608_s6 }
   0xf   :  { %190 = vperm.xlu1 %791, %v172_v15   ;;  %v165_v27 = vld [vmem:[%s1027_s3] sm:$0xff]  ;;  %v166_v46 = vld [vmem:[%s1027_s3 + $0x8] sm:$0xff]  ;;  %v167_v47 = vld [vmem:[%s1027_s3 + $0x10] sm:$0xff] }
  0x10   :  { %185 = vperm.xlu0 %790, %v171_v14   ;;  %692 = vmatprep.mubr.msk.f32.mxu1 %vm193_vm1, %v165_v27  ;;  %v168_v48 = vld [vmem:[%s1027_s3 + $0x18] sm:$0xff]  ;;  %v295_v49 = vld [vmem:[%s1029_s5] sm:$0xff]  ;;  %v296_v4 = vld [vmem:[%s1029_s5 + $0x8] sm:$0xff] }
  0x11   :  { %706 = vmatprep.mubr.msk.f32.mxu0 %vm193_vm1, %v295_v49  ;;  %v297_v5 = vld [vmem:[%s1029_s5 + $0x10] sm:$0xff]  ;;  %v298_v6 = vld [vmem:[%s1029_s5 + $0x18] sm:$0xff]  ;;  %v299_v7 = vld [vmem:[%s1029_s5 + $0x20] sm:$0xff] }
  0x12   :  { %v300_v8 = vld [vmem:[%s1029_s5 + $0x28] sm:$0xff]  ;;  %v301_v9 = vld [vmem:[%s1029_s5 + $0x30] sm:$0xff]  ;;  %v302_v10 = vld [vmem:[%s1029_s5 + $0x38] sm:$0xff] }
  0x13   :  { %318 = vperm.xlu1 %791, %v304_v17   ;;  %v488_v49 = vld [vmem:[%s1031_s7] sm:$0xff] }
  0x14   :  { %313 = vperm.xlu0 %790, %v303_v16  }
  0x17   :  { %328 = vperm.xlu1 %791, %v306_v19  }
  0x18   :  { %323 = vperm.xlu0 %790, %v305_v18  }
  0x1b   :  { %338 = vperm.xlu1 %791, %v308_v21  }
  0x1c   :  { %333 = vperm.xlu0 %790, %v307_v20  }
  0x1f   :  { %348 = vperm.xlu1 %791, %v310_v23  }
  0x20   :  { %343 = vperm.xlu0 %790, %v309_v22  }
  0x23   :  { %501 = vperm.xlu1 %791, %v492_v25  }
  0x24   :  { %496 = vperm.xlu0 %790, %v491_v24  }
  0x28   :  { %506 = vperm.xlu0 %790, %v493_v26  }
  0x81   :  { %v56_v29 = vpop.permute.xlu1 %55 }
  0x83   :  { %v46_v28 = vpop.permute.xlu0 %45 }
  0x85   :  { %v61_v36 = vpop.permute.xlu1 %60 }
  0x87   :  { %v51_v30 = vpop.permute.xlu0 %50 }
  0x8a   :  { %v181_v50 = vpop.permute.xlu1 %180 }
  0x8b   :  { %v176_v51 = vpop.permute.xlu0 %175 }
  0x8e   :  { %v191_v57 = vpop.permute.xlu1 %190 }
  0x8f   :  { %v186_v60 = vpop.permute.xlu0 %185 }
  0x92   :  { %v319_v13 = vpop.permute.xlu1 %318 }
  0x93   :  { %v314_v14 = vpop.permute.xlu0 %313 }
  0x96   :  { %v329_v15 = vpop.permute.xlu1 %328 }
  0x97   :  { %v324_v17 = vpop.permute.xlu0 %323 }
  0x9a   :  { %v339_v26 = vpop.permute.xlu1 %338 }
  0xdb   :  { %v680_v31 = vpop.f32.mrb[0].mxu0 }
  0xdc   :  { %v148_v32 = vadd.f32 %v680_v31, %v51_v30  ;;  %v142_v33 = vpop.f32.mrb[1].mxu0 }
  0xdd   :  { %v143_v34 = vadd.f32 %v142_v33, %v46_v28 }
  0xde   :  { %v162_v35 = vmax.f32 %v148_v32, 0.0 }
  0xdf   :  { %v161_v37 = vmax.f32 %v143_v34, 0.0  ;;  %v683_v38 = vpop.f32.mrb[2].mxu0 }
  0xe0   :  { %v158_v39 = vadd.f32 %v683_v38, %v61_v36  ;;  %v152_v40 = vpop.f32.mrb[3].mxu0  ;;  %v349_v38 = vpop.permute.xlu1 %348 }
  0xe1   :  { %v153_v41 = vadd.f32 %v152_v40, %v56_v29  ;;  %v747_v42 = vpack.c.bf16 %v162_v35, %v161_v37  ;;  %v334_v29 = vpop.permute.xlu0 %333 }
  0xe2   :  { %v164_v43 = vmax.f32 %v158_v39, 0.0 }
  0xe3   :  { %v163_v44 = vmax.f32 %v153_v41, 0.0  ;;  %748 = vmatprep.subr.bf16.mxu1 %v747_v42 }
  0xe4   :  { %750 = vmatpush3.bf16.msra.mxu1 %v747_v42 }
  0xe5   :  { %v751_v45 = vpack.c.bf16 %v164_v43, %v163_v44  ;;  %v344_v41 = vpop.permute.xlu0 %343 }
  0xe7   :  { %752 = vmatprep.subr.bf16.mxu1 %v751_v45 }
  0xe8   :  { %754 = vmatpush3.bf16.msra.mxu1 %v751_v45 }
  0xe9   :  { %775 = vmatprep.subr.bf16.mxu1 %v817_v11 }
  0xeb   :  { %693 = vmatmul.mubr.msk.f32.vlgmr.msra.gmra.mrb[0].mxu1 %vm193_vm1, %v166_v46 }
  0xec   :  { %695 = vmatprep.mubr.msk.f32.mxu1 %vm193_vm1, %v167_v47 }
  0xef   :  { %696 = vmatmul.mubr.msk.f32.gmra.mrb[2].mxu1 %vm193_vm1, %v168_v48 }
  0xf0   :  { %737 = vmatprep.mubr.msk.f32.mxu1 %vm818_vm2, %v819_v12 }
 0x1be   :  { %v694_v52 = vpop.f32.mrb[0].mxu1 }
 0x1bf   :  { %v278_v53 = vadd.f32 %v694_v52, %v181_v50  ;;  %v272_v54 = vpop.f32.mrb[1].mxu1  ;;  %v489_v50 = vld [vmem:[%s1031_s7 + $0x8] sm:$0xff]  ;;  %v497_v52 = vpop.permute.xlu0 %496 }
 0x1c0   :  { %v273_v55 = vadd.f32 %v272_v54, %v176_v51  ;;  %v490_v51 = vld [vmem:[%s1031_s7 + $0x10] sm:$0x1]  ;;  %s792_s7 = scalar_lea.vmem %s608_s6, 384 }
 0x1c1   :  { %v292_v56 = vmax.f32 %v278_v53, 0.0  ;;  %v502_v53 = vpop.permute.xlu1 %501  ;;  %p793_p0 = scmp.ne.s32.totalorder %s608_s6, %s792_s7  ;;  %p798_p2 = scmp.lt.s32.totalorder %s792_s7, %s792_s7 }
 0x1c2   :  { %v291_v58 = vmax.f32 %v273_v55, 0.0  ;;  %v697_v59 = vpop.f32.mrb[2].mxu1 }
 0x1c3   :  { %v288_v61 = vadd.f32 %v697_v59, %v191_v57  ;;  %v282_v62 = vpop.f32.mrb[3].mxu1  ;;  %p799_p3 = por %p798_p2, %p797_p1 }
 0x1c4   :  { %v755_v63 = vpack.c.bf16 %v292_v56, %v291_v58  ;;  %v283_v0 = vadd.f32 %v282_v62, %v186_v60  ;;  %v507_v60 = vpop.permute.xlu0 %506 }
 0x1c5   :  { %v294_v1 = vmax.f32 %v288_v61, 0.0  ;;  %p800_p4 = pnand %p799_p3, %p793_p0 }
 0x1c6   :  { %v293_v2 = vmax.f32 %v283_v0, 0.0  ;;  %756 = vmatprep.subr.bf16.mxu0 %v755_v63 }
 0x1c7   :  { %758 = vmatpush3.bf16.msra.mxu0 %v755_v63 }
 0x1c8   :  { %v759_v3 = vpack.c.bf16 %v294_v1, %v293_v2 }
 0x1ca   :  { %760 = vmatprep.subr.bf16.mxu0 %v759_v3 }
 0x1cb   :  { %762 = vmatpush3.bf16.msra.mxu0 %v759_v3 }
 0x1cc   :  { %763 = vmatprep.subr.bf16.mxu0 %v817_v11 }
 0x1ce   :  { %707 = vmatmul.mubr.msk.f32.vlgmr.msra.gmra.mrb[4].mxu0 %vm193_vm1, %v296_v4 }
 0x1cf   :  { %709 = vmatprep.mubr.msk.f32.mxu0 %vm193_vm1, %v297_v5 }
 0x1d2   :  { %710 = vmatmul.mubr.msk.f32.gmra.mrb[6].mxu0 %vm193_vm1, %v298_v6 }
 0x1d3   :  { %712 = vmatprep.mubr.msk.f32.mxu0 %vm193_vm1, %v299_v7 }
 0x1d6   :  { %713 = vmatmul.mubr.msk.f32.gmra.mrb[8].mxu0 %vm193_vm1, %v300_v8 }
 0x1d7   :  { %715 = vmatprep.mubr.msk.f32.mxu0 %vm193_vm1, %v301_v9 }
 0x1da   :  { %716 = vmatmul.mubr.msk.f32.gmra.mrb[10].mxu0 %vm193_vm1, %v302_v10 }
 0x1db   :  { %734 = vmatprep.mubr.msk.f32.mxu0 %vm818_vm2, %v819_v12 }
 0x2a1   :  { %v708_v16 = vpop.f32.mrb[4].mxu0 }
 0x2a2   :  { %v447_v18 = vadd.f32 %v708_v16, %v319_v13  ;;  %v441_v19 = vpop.f32.mrb[5].mxu0 }
 0x2a3   :  { %v442_v20 = vadd.f32 %v441_v19, %v314_v14 }
 0x2a4   :  { %v481_v21 = vmax.f32 %v447_v18, 0.0 }
 0x2a5   :  { %v480_v22 = vmax.f32 %v442_v20, 0.0  ;;  %v711_v23 = vpop.f32.mrb[6].mxu0 }
 0x2a6   :  { %v457_v24 = vadd.f32 %v711_v23, %v329_v15  ;;  %v451_v25 = vpop.f32.mrb[7].mxu0 }
 0x2a7   :  { %v764_v27 = vpack.c.bf16 %v481_v21, %v480_v22  ;;  %v452_v28 = vadd.f32 %v451_v25, %v324_v17 }
 0x2a8   :  { %v483_v30 = vmax.f32 %v457_v24, 0.0 }
 0x2a9   :  { %v482_v31 = vmax.f32 %v452_v28, 0.0  ;;  %v714_v32 = vpop.f32.mrb[8].mxu0  ;;  %765 = vmatpush3.bf16.msra.mxu0 %v764_v27  ;;  %779 = vmatpush3.bf16.msra.mxu1 %v764_v27 }
 0x2aa   :  { %v467_v33 = vadd.f32 %v714_v32, %v339_v26  ;;  %v461_v34 = vpop.f32.mrb[9].mxu0  ;;  %766 = vmatprep.subr.bf16.mxu0 %v817_v11  ;;  %776 = vmatprep.subr.bf16.mxu1 %v817_v11 }
 0x2ab   :  { %v767_v35 = vpack.c.bf16 %v483_v30, %v482_v31  ;;  %v462_v36 = vadd.f32 %v461_v34, %v334_v29 }
 0x2ac   :  { %v485_v37 = vmax.f32 %v467_v33, 0.0 }
 0x2ad   :  { %v484_v39 = vmax.f32 %v462_v36, 0.0  ;;  %v717_v40 = vpop.f32.mrb[10].mxu0  ;;  %768 = vmatpush3.bf16.msra.mxu0 %v767_v35  ;;  %780 = vmatpush3.bf16.msra.mxu1 %v767_v35 }
 0x2ae   :  { %v477_v42 = vadd.f32 %v717_v40, %v349_v38  ;;  %v471_v43 = vpop.f32.mrb[11].mxu0  ;;  %769 = vmatprep.subr.bf16.mxu0 %v817_v11  ;;  %777 = vmatprep.subr.bf16.mxu1 %v817_v11 }
 0x2af   :  { %v770_v44 = vpack.c.bf16 %v485_v37, %v484_v39  ;;  %v472_v45 = vadd.f32 %v471_v43, %v344_v41 }
 0x2b0   :  { %v487_v46 = vmax.f32 %v477_v42, 0.0 }
 0x2b1   :  { %v486_v47 = vmax.f32 %v472_v45, 0.0  ;;  %771 = vmatpush3.bf16.msra.mxu0 %v770_v44  ;;  %781 = vmatpush3.bf16.msra.mxu1 %v770_v44 }
 0x2b2   :  { %772 = vmatprep.subr.bf16.mxu0 %v817_v11  ;;  %778 = vmatprep.subr.bf16.mxu1 %v817_v11 }
 0x2b3   :  { %v773_v48 = vpack.c.bf16 %v487_v46, %v486_v47 }
 0x2b5   :  { %774 = vmatpush3.bf16.msra.mxu0 %v773_v48  ;;  %782 = vmatpush3.bf16.msra.mxu1 %v773_v48 }
 0x2b8   :  { %735 = vmatmul.mubr.msk.f32.vlgmr.msra.gmra.mrb[12].mxu0 %vm509_vm3, %v488_v49  ;;  %738 = vmatmul.mubr.msk.f32.vlgmr.msra.gmra.mrb[4].mxu1 %vm509_vm3, %v489_v50 }
 0x2b9   :  { %740 = vmatprep.mubr.msk.f32.mxu1 %vm818_vm2, %v819_v12 }
 0x2bc   :  { %741 = vmatmul.mubr.msk.f32.gmra.mrb[6].mxu1 %vm509_vm3, %v490_v51 }
 0x38b   :  { %v585_v54 = vpop.f32.mrb[12].mxu0  ;;  %v590_v55 = vpop.f32.mrb[4].mxu1 }
 0x38c   :  { %v586_v56 = vadd.f32 %v585_v54, %v497_v52  ;;  %v591_v57 = vadd.f32 %v590_v55, %v502_v53  ;;  %v739_v58 = vpop.f32.mrb[5].mxu1  ;;  %v736_v59 = vpop.f32.mrb[13].mxu0 }
 0x38e   :  { %599 = vst [vmem:[#allocation2] sm:$0xff] %v586_v56  ;;  %600 = vst [vmem:[#allocation2 + $0x8] sm:$0xff] %v591_v57 }
 0x38f   :  { %v595_v61 = vpop.f32.mrb[6].mxu1 }
 0x390   :  { %v596_v62 = vadd.f32 %v595_v61, %v507_v60  ;;  %v742_v63 = vpop.f32.mrb[7].mxu1 }
 0x392   :  { %601 = vst [vmem:[#allocation2 + $0x10] sm:$0x1] %v596_v62 }
 0x393   :  { %803 = shalt.err (!%p800_p4)
}
 0x394   :  { %s804_s13 = scalar_lea.hbm %s1033_s9, 384 }
 0x395   :  { %p805_p5 = scmp.ne.s32.totalorder %s1033_s9, %s804_s13  ;;  %p808_p6 = scmp.lt.u32.totalorder %s804_s13, %s1033_s9 }
 0x397   :  { %p810_p7 = pnand %p808_p6, %p805_p5 }
 0x399   :  { %813 = shalt.err (!%p810_p7)
}
 0x39a   :  { %s821_s3 = smov 128   ;;  %s822_s18 = smov 8  }
 0x39b   :  { %613 = dma.vmem_to_hbm [thread:$0]  %s608_s6, 384, %s1033_s9, [#allocation3], %s821_s3, %s821_s3, %s822_s18  }
 0x39c   :  { %814 = dma.done.wait [#allocation3], 384  }
 0x39d   :  { %815 = vsyncadd [#allocation3], 4294966912 }
 0x39e   :  { %617 = vsyncpa [#allocation3], 1 }

</bundles_post_ra>
